<compile_context>
chip_gen: v5e
topology: v5e:2x2
jax: 0.10.0
libtpu: 0.0.40
codegen_flags: <defaults>
</compile_context>

<pallas_src>
import functools

import jax
import jax.numpy as jnp
from jax.experimental import pallas as pl
from jax.experimental.pallas import tpu as pltpu


_TARGET_BLOCK_ELEMS = 512 * 1024   # ~2 MiB per f32 buffer


def _pfla_kernel(bp_ref, sl_ref, ic_ref, x_ref, o_ref, *, num_bp, monotonic):
    """bp/sl/ic: SMEM scalar-prefetch f32 arrays of shape (num_bp,).

    bp = [x_vals..., right_bound]; sl/ic hold per-segment slope/intercept, with
    the final entry (1, 0) implementing the identity tail for x >= right_bound.
    """
    x = x_ref[...].astype(jnp.float32)
    slope = jnp.zeros_like(x)
    intercept = jnp.zeros_like(x)
    if monotonic:
        # Ascending single-compare cascade (valid for monotonically increasing
        # breakpoints): the last true `x >= bp[i]` wins.
        for i in range(num_bp):
            ge = x >= bp_ref[i]
            slope = jnp.where(ge, sl_ref[i], slope)
            intercept = jnp.where(ge, ic_ref[i], intercept)
    else:
        # Exact mirror of the PyTorch where-cascade: (x>=lo)&(x<hi) is
        # ge_lo & ~ge_hi, so each breakpoint compare is computed once and reused.
        ge_lo = x >= bp_ref[0]
        for i in range(num_bp - 1):
            ge_hi = x >= bp_ref[i + 1]
            m = ge_lo & jnp.logical_not(ge_hi)
            slope = jnp.where(m, sl_ref[i], slope)
            intercept = jnp.where(m, ic_ref[i], intercept)
            ge_lo = ge_hi
        # Identity tail: x >= right_bound -> slope=1, intercept=0.
        slope = jnp.where(ge_lo, sl_ref[num_bp - 1], slope)
        intercept = jnp.where(ge_lo, ic_ref[num_bp - 1], intercept)
    o_ref[...] = (slope * x + intercept).astype(o_ref.dtype)


def _cdiv(a, b):
    return (a + b - 1) // b


def _round_up(a, b):
    return _cdiv(a, b) * b


def _pick_block_rows(rows, lanes, sub):
    """Largest multiple-of-`sub` divisor of `rows`, capped to ~2 MiB f32 blocks
    and (when possible) >= 2 grid steps so v7x's two TensorCores both work."""
    cap = min(rows, max(sub, _TARGET_BLOCK_ELEMS // lanes))
    if rows >= 2 * sub:
        cap = min(cap, max(sub, rows // 2))
    cap -= cap % sub
    b = max(cap, sub)
    while b > sub:
        if rows % b == 0:
            return b
        b -= sub
    return sub


def _plan_layout(n, itemsize):
    """Return (lanes, rows, block_rows).  rows*lanes == n means no padding."""
    sub = {4: 8, 2: 16, 1: 32}.get(itemsize, 8)
    # Fast path: element count factors into a lane-dense slab -> no pad/slice.
    for lanes in (1024, 512, 256, 128):
        if n % lanes == 0:
            rows = n // lanes
            if rows % sub == 0:
                return lanes, rows, _pick_block_rows(rows, lanes, sub)
            if rows * lanes <= 2 * _TARGET_BLOCK_ELEMS:
                return lanes, rows, rows        # single full-array block
            break
    # Ragged fallback: pad to a (rows_padded, 1024) slab.
    lanes = 1024
    rows = _cdiv(n, lanes)
    block_rows = max(sub, min(_round_up(_cdiv(rows, 2), sub),
                              _TARGET_BLOCK_ELEMS // lanes))
    return lanes, _round_up(rows, block_rows), block_rows


@functools.partial(jax.jit,
                   static_argnames=("right_bound", "assume_monotonic_breakpoints"))
def pfla_forward(x, x_vals, y_vals, right_bound,
                 assume_monotonic_breakpoints=False):
    """Piecewise fully-learnable activation, y = PFLA(x).

    x:           arbitrary-shape input tensor.
    x_vals:      (P,) learnable breakpoints.
    y_vals:      (P,) learnable values at the breakpoints.
    right_bound: static config scalar (python float).
    """
    orig_shape = x.shape
    n = x.size
    num_points = x_vals.shape[0]

    xv = x_vals.astype(jnp.float32)
    yv = y_vals.astype(jnp.float32)
    rb = jnp.float32(right_bound)

    # Per-segment slopes / intercepts (tiny; computed once outside the kernel).
    # NOTE: adjacent equal breakpoints (or x_vals[-1] == right_bound) yield
    # inf/nan slopes, exactly like the PyTorch module.
    sl_in = (yv[1:] - yv[:-1]) / (xv[1:] - xv[:-1])              # (P-1,)
    ic_in = yv[:-1] - sl_in * xv[:-1]                            # (P-1,)
    sl_last = (rb - yv[-1]) / (rb - xv[-1])
    ic_last = yv[-1] - sl_last * xv[-1]
    one = jnp.ones((1,), jnp.float32)
    zero = jnp.zeros((1,), jnp.float32)
    breakpoints = jnp.concatenate([xv, rb[None]])                # (P+1,)
    slopes = jnp.concatenate([sl_in, sl_last[None], one])        # (P+1,)
    intercepts = jnp.concatenate([ic_in, ic_last[None], zero])   # (P+1,)
    num_bp = num_points + 1

    lanes, rows, block_rows = _plan_layout(n, x.dtype.itemsize)
    padded = rows * lanes
    x_flat = x.reshape(-1)
    if padded != n:
        x_flat = jnp.pad(x_flat, (0, padded - n))
    x2d = x_flat.reshape(rows, lanes)

    kernel = functools.partial(_pfla_kernel, num_bp=num_bp,
                               monotonic=assume_monotonic_breakpoints)

    out2d = pl.pallas_call(
        kernel,
        out_shape=jax.ShapeDtypeStruct((rows, lanes), x.dtype),
        grid_spec=pltpu.PrefetchScalarGridSpec(
            num_scalar_prefetch=3,
            grid=(rows // block_rows,),
            in_specs=[pl.BlockSpec((block_rows, lanes),
                                   lambda i, bp, sl, ic: (i, 0))],
            out_specs=pl.BlockSpec((block_rows, lanes),
                                   lambda i, bp, sl, ic: (i, 0)),
        ),
        compiler_params=pltpu.CompilerParams(
            dimension_semantics=("parallel",),
        ),
    )(breakpoints, slopes, intercepts, x2d)

    if padded != n:
        return out2d.reshape(-1)[:n].reshape(orig_shape)
    return out2d.reshape(orig_shape)


def pfla_reference(x, x_vals, y_vals, right_bound):
    """Plain-JAX mirror of the PyTorch forward (same where cascade)."""
    result = jnp.zeros_like(x)
    result = jnp.where(x < x_vals[0], 0.0, result)
    P = x_vals.shape[0]
    for i in range(P - 1):
        slope = (y_vals[i + 1] - y_vals[i]) / (x_vals[i + 1] - x_vals[i])
        intercept = y_vals[i] - slope * x_vals[i]
        seg = slope * x + intercept
        result = jnp.where((x >= x_vals[i]) & (x < x_vals[i + 1]), seg, result)
    slope = (right_bound - y_vals[-1]) / (right_bound - x_vals[-1])
    intercept = y_vals[-1] - slope * x_vals[-1]
    seg = slope * x + intercept
    result = jnp.where((x >= x_vals[-1]) & (x < right_bound), seg, result)
    result = jnp.where(x >= right_bound, x, result)
    return result


if __name__ == "__main__":
    # Deterministic "config" mirroring the PyTorch module init.
    num_points = 16        # config.pfla_num_points
    left_bound = -6.0      # config.pfla_left_bound
    right_bound = 6.0      # config.pfla_right_bound

    # Parameter init exactly like the module:
    #   x_vals = linspace(left, right, P+2)[1:-1]; y_vals = GELU(x_vals)
    x_vals = jnp.linspace(left_bound, right_bound, num_points + 2,
                          dtype=jnp.float32)[1:-1]
    y_vals = jax.nn.gelu(x_vals, approximate=False)

    key = jax.random.PRNGKey(0)
    test_shapes = [
        (2, 8, 32),      # fast path, single full-array block
        (4, 128, 128),   # fast path, tiled grid (>= 2 steps for megacore)
        (3, 7, 11),      # ragged fallback (pad path)
    ]
    for idx, shape in enumerate(test_shapes):
        key, sub = jax.random.split(key)
        # Span all regions: below left bound, interior segments, beyond right.
        x = jax.random.uniform(sub, shape, dtype=jnp.float32,
                               minval=-9.0, maxval=9.0)
        ref = pfla_reference(x, x_vals, y_vals, right_bound)

        y = pfla_forward(x, x_vals, y_vals, right_bound)
        jax.block_until_ready(y)
        assert y.shape == x.shape and y.dtype == x.dtype
        assert jnp.allclose(y, ref, atol=1e-5, rtol=1e-5), f"mismatch (exact) {shape}"

        # Monotonic fast cascade (valid here since init breakpoints are sorted).
        y2 = pfla_forward(x, x_vals, y_vals, right_bound,
                          assume_monotonic_breakpoints=True)
        jax.block_until_ready(y2)
        assert jnp.allclose(y2, ref, atol=1e-5, rtol=1e-5), f"mismatch (mono) {shape}"

    print("KERNEL_OK")
</pallas_src>

<mosaic_0001>
module attributes {stable_mosaic.version = 11 : i64} {
  func.func @_pfla_kernel(%arg0: i32, %arg1: memref<17xf32, #tpu.memory_space<smem>>, %arg2: memref<17xf32, #tpu.memory_space<smem>>, %arg3: memref<17xf32, #tpu.memory_space<smem>>, %arg4: memref<1x512xf32, #tpu.memory_space<vmem>>, %arg5: memref<1x512xf32, #tpu.memory_space<vmem>>) attributes {dimension_semantics = [#tpu.dimension_semantics<parallel>], iteration_bounds = array<i64: 1>, scalar_prefetch = 3 : i64, scratch_operands = 0 : i64, tpu.core_type = #tpu.core_type<tc>, window_params = [{transform_indices = @transform_0, window_bounds = array<i64: 1, 512>}, {transform_indices = @transform_1, window_bounds = array<i64: 1, 512>}]} {
    %c0 = arith.constant 0 : index
    %c0_0 = arith.constant 0 : index
    %0 = vector.load %arg4[%c0, %c0_0] : memref<1x512xf32, #tpu.memory_space<vmem>>, vector<1x512xf32>
    %cst = arith.constant 0.000000e+00 : f32
    %1 = vector.broadcast %cst : f32 to vector<1x512xf32>
    %cst_1 = arith.constant 0.000000e+00 : f32
    %2 = vector.broadcast %cst_1 : f32 to vector<1x512xf32>
    %c0_2 = arith.constant 0 : index
    %3 = memref.load %arg1[%c0_2] : memref<17xf32, #tpu.memory_space<smem>>
    %4 = vector.broadcast %3 : f32 to vector<1x512xf32>
    %5 = arith.cmpf oge, %0, %4 : vector<1x512xf32>
    %c1 = arith.constant 1 : index
    %6 = memref.load %arg1[%c1] : memref<17xf32, #tpu.memory_space<smem>>
    %7 = vector.broadcast %6 : f32 to vector<1x512xf32>
    %8 = arith.cmpf oge, %0, %7 : vector<1x512xf32>
    %cst_3 = arith.constant dense<true> : vector<1x512xi1>
    %9 = arith.xori %8, %cst_3 : vector<1x512xi1>
    %10 = arith.andi %5, %9 : vector<1x512xi1>
    %c0_4 = arith.constant 0 : index
    %11 = memref.load %arg2[%c0_4] : memref<17xf32, #tpu.memory_space<smem>>
    %12 = vector.broadcast %11 : f32 to vector<1x512xf32>
    %13 = arith.select %10, %12, %1 : vector<1x512xi1>, vector<1x512xf32>
    %c0_5 = arith.constant 0 : index
    %14 = memref.load %arg3[%c0_5] : memref<17xf32, #tpu.memory_space<smem>>
    %15 = vector.broadcast %14 : f32 to vector<1x512xf32>
    %16 = arith.select %10, %15, %2 : vector<1x512xi1>, vector<1x512xf32>
    %c2 = arith.constant 2 : index
    %17 = memref.load %arg1[%c2] : memref<17xf32, #tpu.memory_space<smem>>
    %18 = vector.broadcast %17 : f32 to vector<1x512xf32>
    %19 = arith.cmpf oge, %0, %18 : vector<1x512xf32>
    %cst_6 = arith.constant dense<true> : vector<1x512xi1>
    %20 = arith.xori %19, %cst_6 : vector<1x512xi1>
    %21 = arith.andi %8, %20 : vector<1x512xi1>
    %c1_7 = arith.constant 1 : index
    %22 = memref.load %arg2[%c1_7] : memref<17xf32, #tpu.memory_space<smem>>
    %23 = vector.broadcast %22 : f32 to vector<1x512xf32>
    %24 = arith.select %21, %23, %13 : vector<1x512xi1>, vector<1x512xf32>
    %c1_8 = arith.constant 1 : index
    %25 = memref.load %arg3[%c1_8] : memref<17xf32, #tpu.memory_space<smem>>
    %26 = vector.broadcast %25 : f32 to vector<1x512xf32>
    %27 = arith.select %21, %26, %16 : vector<1x512xi1>, vector<1x512xf32>
    %c3 = arith.constant 3 : index
    %28 = memref.load %arg1[%c3] : memref<17xf32, #tpu.memory_space<smem>>
    %29 = vector.broadcast %28 : f32 to vector<1x512xf32>
    %30 = arith.cmpf oge, %0, %29 : vector<1x512xf32>
    %cst_9 = arith.constant dense<true> : vector<1x512xi1>
    %31 = arith.xori %30, %cst_9 : vector<1x512xi1>
    %32 = arith.andi %19, %31 : vector<1x512xi1>
    %c2_10 = arith.constant 2 : index
    %33 = memref.load %arg2[%c2_10] : memref<17xf32, #tpu.memory_space<smem>>
    %34 = vector.broadcast %33 : f32 to vector<1x512xf32>
    %35 = arith.select %32, %34, %24 : vector<1x512xi1>, vector<1x512xf32>
    %c2_11 = arith.constant 2 : index
    %36 = memref.load %arg3[%c2_11] : memref<17xf32, #tpu.memory_space<smem>>
    %37 = vector.broadcast %36 : f32 to vector<1x512xf32>
    %38 = arith.select %32, %37, %27 : vector<1x512xi1>, vector<1x512xf32>
    %c4 = arith.constant 4 : index
    %39 = memref.load %arg1[%c4] : memref<17xf32, #tpu.memory_space<smem>>
    %40 = vector.broadcast %39 : f32 to vector<1x512xf32>
    %41 = arith.cmpf oge, %0, %40 : vector<1x512xf32>
    %cst_12 = arith.constant dense<true> : vector<1x512xi1>
    %42 = arith.xori %41, %cst_12 : vector<1x512xi1>
    %43 = arith.andi %30, %42 : vector<1x512xi1>
    %c3_13 = arith.constant 3 : index
    %44 = memref.load %arg2[%c3_13] : memref<17xf32, #tpu.memory_space<smem>>
    %45 = vector.broadcast %44 : f32 to vector<1x512xf32>
    %46 = arith.select %43, %45, %35 : vector<1x512xi1>, vector<1x512xf32>
    %c3_14 = arith.constant 3 : index
    %47 = memref.load %arg3[%c3_14] : memref<17xf32, #tpu.memory_space<smem>>
    %48 = vector.broadcast %47 : f32 to vector<1x512xf32>
    %49 = arith.select %43, %48, %38 : vector<1x512xi1>, vector<1x512xf32>
    %c5 = arith.constant 5 : index
    %50 = memref.load %arg1[%c5] : memref<17xf32, #tpu.memory_space<smem>>
    %51 = vector.broadcast %50 : f32 to vector<1x512xf32>
    %52 = arith.cmpf oge, %0, %51 : vector<1x512xf32>
    %cst_15 = arith.constant dense<true> : vector<1x512xi1>
    %53 = arith.xori %52, %cst_15 : vector<1x512xi1>
    %54 = arith.andi %41, %53 : vector<1x512xi1>
    %c4_16 = arith.constant 4 : index
    %55 = memref.load %arg2[%c4_16] : memref<17xf32, #tpu.memory_space<smem>>
    %56 = vector.broadcast %55 : f32 to vector<1x512xf32>
    %57 = arith.select %54, %56, %46 : vector<1x512xi1>, vector<1x512xf32>
    %c4_17 = arith.constant 4 : index
    %58 = memref.load %arg3[%c4_17] : memref<17xf32, #tpu.memory_space<smem>>
    %59 = vector.broadcast %58 : f32 to vector<1x512xf32>
    %60 = arith.select %54, %59, %49 : vector<1x512xi1>, vector<1x512xf32>
    %c6 = arith.constant 6 : index
    %61 = memref.load %arg1[%c6] : memref<17xf32, #tpu.memory_space<smem>>
    %62 = vector.broadcast %61 : f32 to vector<1x512xf32>
    %63 = arith.cmpf oge, %0, %62 : vector<1x512xf32>
    %cst_18 = arith.constant dense<true> : vector<1x512xi1>
    %64 = arith.xori %63, %cst_18 : vector<1x512xi1>
    %65 = arith.andi %52, %64 : vector<1x512xi1>
    %c5_19 = arith.constant 5 : index
    %66 = memref.load %arg2[%c5_19] : memref<17xf32, #tpu.memory_space<smem>>
    %67 = vector.broadcast %66 : f32 to vector<1x512xf32>
    %68 = arith.select %65, %67, %57 : vector<1x512xi1>, vector<1x512xf32>
    %c5_20 = arith.constant 5 : index
    %69 = memref.load %arg3[%c5_20] : memref<17xf32, #tpu.memory_space<smem>>
    %70 = vector.broadcast %69 : f32 to vector<1x512xf32>
    %71 = arith.select %65, %70, %60 : vector<1x512xi1>, vector<1x512xf32>
    %c7 = arith.constant 7 : index
    %72 = memref.load %arg1[%c7] : memref<17xf32, #tpu.memory_space<smem>>
    %73 = vector.broadcast %72 : f32 to vector<1x512xf32>
    %74 = arith.cmpf oge, %0, %73 : vector<1x512xf32>
    %cst_21 = arith.constant dense<true> : vector<1x512xi1>
    %75 = arith.xori %74, %cst_21 : vector<1x512xi1>
    %76 = arith.andi %63, %75 : vector<1x512xi1>
    %c6_22 = arith.constant 6 : index
    %77 = memref.load %arg2[%c6_22] : memref<17xf32, #tpu.memory_space<smem>>
    %78 = vector.broadcast %77 : f32 to vector<1x512xf32>
    %79 = arith.select %76, %78, %68 : vector<1x512xi1>, vector<1x512xf32>
    %c6_23 = arith.constant 6 : index
    %80 = memref.load %arg3[%c6_23] : memref<17xf32, #tpu.memory_space<smem>>
    %81 = vector.broadcast %80 : f32 to vector<1x512xf32>
    %82 = arith.select %76, %81, %71 : vector<1x512xi1>, vector<1x512xf32>
    %c8 = arith.constant 8 : index
    %83 = memref.load %arg1[%c8] : memref<17xf32, #tpu.memory_space<smem>>
    %84 = vector.broadcast %83 : f32 to vector<1x512xf32>
    %85 = arith.cmpf oge, %0, %84 : vector<1x512xf32>
    %cst_24 = arith.constant dense<true> : vector<1x512xi1>
    %86 = arith.xori %85, %cst_24 : vector<1x512xi1>
    %87 = arith.andi %74, %86 : vector<1x512xi1>
    %c7_25 = arith.constant 7 : index
    %88 = memref.load %arg2[%c7_25] : memref<17xf32, #tpu.memory_space<smem>>
    %89 = vector.broadcast %88 : f32 to vector<1x512xf32>
    %90 = arith.select %87, %89, %79 : vector<1x512xi1>, vector<1x512xf32>
    %c7_26 = arith.constant 7 : index
    %91 = memref.load %arg3[%c7_26] : memref<17xf32, #tpu.memory_space<smem>>
    %92 = vector.broadcast %91 : f32 to vector<1x512xf32>
    %93 = arith.select %87, %92, %82 : vector<1x512xi1>, vector<1x512xf32>
    %c9 = arith.constant 9 : index
    %94 = memref.load %arg1[%c9] : memref<17xf32, #tpu.memory_space<smem>>
    %95 = vector.broadcast %94 : f32 to vector<1x512xf32>
    %96 = arith.cmpf oge, %0, %95 : vector<1x512xf32>
    %cst_27 = arith.constant dense<true> : vector<1x512xi1>
    %97 = arith.xori %96, %cst_27 : vector<1x512xi1>
    %98 = arith.andi %85, %97 : vector<1x512xi1>
    %c8_28 = arith.constant 8 : index
    %99 = memref.load %arg2[%c8_28] : memref<17xf32, #tpu.memory_space<smem>>
    %100 = vector.broadcast %99 : f32 to vector<1x512xf32>
    %101 = arith.select %98, %100, %90 : vector<1x512xi1>, vector<1x512xf32>
    %c8_29 = arith.constant 8 : index
    %102 = memref.load %arg3[%c8_29] : memref<17xf32, #tpu.memory_space<smem>>
    %103 = vector.broadcast %102 : f32 to vector<1x512xf32>
    %104 = arith.select %98, %103, %93 : vector<1x512xi1>, vector<1x512xf32>
    %c10 = arith.constant 10 : index
    %105 = memref.load %arg1[%c10] : memref<17xf32, #tpu.memory_space<smem>>
    %106 = vector.broadcast %105 : f32 to vector<1x512xf32>
    %107 = arith.cmpf oge, %0, %106 : vector<1x512xf32>
    %cst_30 = arith.constant dense<true> : vector<1x512xi1>
    %108 = arith.xori %107, %cst_30 : vector<1x512xi1>
    %109 = arith.andi %96, %108 : vector<1x512xi1>
    %c9_31 = arith.constant 9 : index
    %110 = memref.load %arg2[%c9_31] : memref<17xf32, #tpu.memory_space<smem>>
    %111 = vector.broadcast %110 : f32 to vector<1x512xf32>
    %112 = arith.select %109, %111, %101 : vector<1x512xi1>, vector<1x512xf32>
    %c9_32 = arith.constant 9 : index
    %113 = memref.load %arg3[%c9_32] : memref<17xf32, #tpu.memory_space<smem>>
    %114 = vector.broadcast %113 : f32 to vector<1x512xf32>
    %115 = arith.select %109, %114, %104 : vector<1x512xi1>, vector<1x512xf32>
    %c11 = arith.constant 11 : index
    %116 = memref.load %arg1[%c11] : memref<17xf32, #tpu.memory_space<smem>>
    %117 = vector.broadcast %116 : f32 to vector<1x512xf32>
    %118 = arith.cmpf oge, %0, %117 : vector<1x512xf32>
    %cst_33 = arith.constant dense<true> : vector<1x512xi1>
    %119 = arith.xori %118, %cst_33 : vector<1x512xi1>
    %120 = arith.andi %107, %119 : vector<1x512xi1>
    %c10_34 = arith.constant 10 : index
    %121 = memref.load %arg2[%c10_34] : memref<17xf32, #tpu.memory_space<smem>>
    %122 = vector.broadcast %121 : f32 to vector<1x512xf32>
    %123 = arith.select %120, %122, %112 : vector<1x512xi1>, vector<1x512xf32>
    %c10_35 = arith.constant 10 : index
    %124 = memref.load %arg3[%c10_35] : memref<17xf32, #tpu.memory_space<smem>>
    %125 = vector.broadcast %124 : f32 to vector<1x512xf32>
    %126 = arith.select %120, %125, %115 : vector<1x512xi1>, vector<1x512xf32>
    %c12 = arith.constant 12 : index
    %127 = memref.load %arg1[%c12] : memref<17xf32, #tpu.memory_space<smem>>
    %128 = vector.broadcast %127 : f32 to vector<1x512xf32>
    %129 = arith.cmpf oge, %0, %128 : vector<1x512xf32>
    %cst_36 = arith.constant dense<true> : vector<1x512xi1>
    %130 = arith.xori %129, %cst_36 : vector<1x512xi1>
    %131 = arith.andi %118, %130 : vector<1x512xi1>
    %c11_37 = arith.constant 11 : index
    %132 = memref.load %arg2[%c11_37] : memref<17xf32, #tpu.memory_space<smem>>
    %133 = vector.broadcast %132 : f32 to vector<1x512xf32>
    %134 = arith.select %131, %133, %123 : vector<1x512xi1>, vector<1x512xf32>
    %c11_38 = arith.constant 11 : index
    %135 = memref.load %arg3[%c11_38] : memref<17xf32, #tpu.memory_space<smem>>
    %136 = vector.broadcast %135 : f32 to vector<1x512xf32>
    %137 = arith.select %131, %136, %126 : vector<1x512xi1>, vector<1x512xf32>
    %c13 = arith.constant 13 : index
    %138 = memref.load %arg1[%c13] : memref<17xf32, #tpu.memory_space<smem>>
    %139 = vector.broadcast %138 : f32 to vector<1x512xf32>
    %140 = arith.cmpf oge, %0, %139 : vector<1x512xf32>
    %cst_39 = arith.constant dense<true> : vector<1x512xi1>
    %141 = arith.xori %140, %cst_39 : vector<1x512xi1>
    %142 = arith.andi %129, %141 : vector<1x512xi1>
    %c12_40 = arith.constant 12 : index
    %143 = memref.load %arg2[%c12_40] : memref<17xf32, #tpu.memory_space<smem>>
    %144 = vector.broadcast %143 : f32 to vector<1x512xf32>
    %145 = arith.select %142, %144, %134 : vector<1x512xi1>, vector<1x512xf32>
    %c12_41 = arith.constant 12 : index
    %146 = memref.load %arg3[%c12_41] : memref<17xf32, #tpu.memory_space<smem>>
    %147 = vector.broadcast %146 : f32 to vector<1x512xf32>
    %148 = arith.select %142, %147, %137 : vector<1x512xi1>, vector<1x512xf32>
    %c14 = arith.constant 14 : index
    %149 = memref.load %arg1[%c14] : memref<17xf32, #tpu.memory_space<smem>>
    %150 = vector.broadcast %149 : f32 to vector<1x512xf32>
    %151 = arith.cmpf oge, %0, %150 : vector<1x512xf32>
    %cst_42 = arith.constant dense<true> : vector<1x512xi1>
    %152 = arith.xori %151, %cst_42 : vector<1x512xi1>
    %153 = arith.andi %140, %152 : vector<1x512xi1>
    %c13_43 = arith.constant 13 : index
    %154 = memref.load %arg2[%c13_43] : memref<17xf32, #tpu.memory_space<smem>>
    %155 = vector.broadcast %154 : f32 to vector<1x512xf32>
    %156 = arith.select %153, %155, %145 : vector<1x512xi1>, vector<1x512xf32>
    %c13_44 = arith.constant 13 : index
    %157 = memref.load %arg3[%c13_44] : memref<17xf32, #tpu.memory_space<smem>>
    %158 = vector.broadcast %157 : f32 to vector<1x512xf32>
    %159 = arith.select %153, %158, %148 : vector<1x512xi1>, vector<1x512xf32>
    %c15 = arith.constant 15 : index
    %160 = memref.load %arg1[%c15] : memref<17xf32, #tpu.memory_space<smem>>
    %161 = vector.broadcast %160 : f32 to vector<1x512xf32>
    %162 = arith.cmpf oge, %0, %161 : vector<1x512xf32>
    %cst_45 = arith.constant dense<true> : vector<1x512xi1>
    %163 = arith.xori %162, %cst_45 : vector<1x512xi1>
    %164 = arith.andi %151, %163 : vector<1x512xi1>
    %c14_46 = arith.constant 14 : index
    %165 = memref.load %arg2[%c14_46] : memref<17xf32, #tpu.memory_space<smem>>
    %166 = vector.broadcast %165 : f32 to vector<1x512xf32>
    %167 = arith.select %164, %166, %156 : vector<1x512xi1>, vector<1x512xf32>
    %c14_47 = arith.constant 14 : index
    %168 = memref.load %arg3[%c14_47] : memref<17xf32, #tpu.memory_space<smem>>
    %169 = vector.broadcast %168 : f32 to vector<1x512xf32>
    %170 = arith.select %164, %169, %159 : vector<1x512xi1>, vector<1x512xf32>
    %c16 = arith.constant 16 : index
    %171 = memref.load %arg1[%c16] : memref<17xf32, #tpu.memory_space<smem>>
    %172 = vector.broadcast %171 : f32 to vector<1x512xf32>
    %173 = arith.cmpf oge, %0, %172 : vector<1x512xf32>
    %cst_48 = arith.constant dense<true> : vector<1x512xi1>
    %174 = arith.xori %173, %cst_48 : vector<1x512xi1>
    %175 = arith.andi %162, %174 : vector<1x512xi1>
    %c15_49 = arith.constant 15 : index
    %176 = memref.load %arg2[%c15_49] : memref<17xf32, #tpu.memory_space<smem>>
    %177 = vector.broadcast %176 : f32 to vector<1x512xf32>
    %178 = arith.select %175, %177, %167 : vector<1x512xi1>, vector<1x512xf32>
    %c15_50 = arith.constant 15 : index
    %179 = memref.load %arg3[%c15_50] : memref<17xf32, #tpu.memory_space<smem>>
    %180 = vector.broadcast %179 : f32 to vector<1x512xf32>
    %181 = arith.select %175, %180, %170 : vector<1x512xi1>, vector<1x512xf32>
    %c16_51 = arith.constant 16 : index
    %182 = memref.load %arg2[%c16_51] : memref<17xf32, #tpu.memory_space<smem>>
    %183 = vector.broadcast %182 : f32 to vector<1x512xf32>
    %184 = arith.select %173, %183, %178 : vector<1x512xi1>, vector<1x512xf32>
    %c16_52 = arith.constant 16 : index
    %185 = memref.load %arg3[%c16_52] : memref<17xf32, #tpu.memory_space<smem>>
    %186 = vector.broadcast %185 : f32 to vector<1x512xf32>
    %187 = arith.select %173, %186, %181 : vector<1x512xi1>, vector<1x512xf32>
    %188 = arith.mulf %184, %0 : vector<1x512xf32>
    %189 = arith.addf %188, %187 : vector<1x512xf32>
    %c0_53 = arith.constant 0 : index
    %c0_54 = arith.constant 0 : index
    %190 = vector.load %arg5[%c0_53, %c0_54] : memref<1x512xf32, #tpu.memory_space<vmem>>, vector<1x512xf32>
    tpu.vector_store %arg5[%c0_53, %c0_54], %189 {strides = array<i32>} : memref<1x512xf32, #tpu.memory_space<vmem>>, vector<1x512xf32>,
    return
  }
  func.func @transform_0(%arg0: i32, %arg1: memref<17xf32, #tpu.memory_space<smem>>, %arg2: memref<17xf32, #tpu.memory_space<smem>>, %arg3: memref<17xf32, #tpu.memory_space<smem>>) -> (i32, i32) {
    %c0_i32 = arith.constant 0 : i32
    %c0_i32_0 = arith.constant 0 : i32
    return %arg0, %c0_i32 : i32, i32
  }
  func.func @transform_1(%arg0: i32, %arg1: memref<17xf32, #tpu.memory_space<smem>>, %arg2: memref<17xf32, #tpu.memory_space<smem>>, %arg3: memref<17xf32, #tpu.memory_space<smem>>) -> (i32, i32) {
    %c0_i32 = arith.constant 0 : i32
    %c0_i32_0 = arith.constant 0 : i32
    return %arg0, %c0_i32 : i32, i32
  }
}

</mosaic_0001>

<bundles_post_ra>
// kernel: pfla_forward.1
= control target key start
LH: loop header
LB: loop body
LE: loop exit
PB: predicated region body
PF: predicated region fallthrough
CT: control target
= control target key end

     0   :  { %s316_s21 = smov [#allocation3]   ;;  %s317_s22 = smov [#allocation4]   ;;  %s516_s0 = inlined_call_operand.vmem [shape: f32[17], index: 0, kind: input, shape index: {}]   ;;  %s517_s3 = inlined_call_operand.vmem [shape: f32[1,512], index: 3, kind: input, shape index: {}]   ;;  %s518_s4 = inlined_call_operand.vmem [shape: f32[1,512], index: 4, kind: output, shape index: {}]   ;;  %s519_s1 = inlined_call_operand.vmem [shape: f32[17], index: 1, kind: input, shape index: {}]   ;;  %s520_s2 = inlined_call_operand.vmem [shape: f32[17], index: 2, kind: input, shape index: {}]  }
   0x1   :  { %s10_s17 = sshll.u32 %s516_s0, 4  ;;  %s15_s20 = sshll.u32 %s519_s1, 4  ;;  %s11_s17 = int_to_ptr.vmem [resolvable:$true] %s10_s17  ;;  %s16_s20 = int_to_ptr.vmem [resolvable:$true] %s15_s20 }
   0x2   :  { %13 = dma.vmem_to_smem %s11_s17, 16, %s316_s21, [#allocation2] }
   0x3   :  { %18 = dma.vmem_to_smem %s16_s20, 16, %s317_s22, [#allocation2] }
   0x4   :  { %s20_s25 = sshll.u32 %s520_s2, 4  ;;  %s318_s26 = smov [#allocation5]   ;;  %s21_s25 = int_to_ptr.vmem [resolvable:$true] %s20_s25 }
   0x5   :  { %23 = dma.vmem_to_smem %s21_s25, 16, %s318_s26, [#allocation2] }
   0x6   :  { %314 = dma.done.wait [#allocation2], 48 }
   0x7   :  { %315 = vsyncadd [#allocation2], 4294967248 }
   0x8   :  { %26 = sfence }
   0x9   :  { %s30_s0 = sld [smem:[#allocation3]]  ;;  %v357_v0 = vld [vmem:[%s517_s3] sm:$0xf]  ;;  %vm319_vm2 = vmmov 1   ;;  %v217_v33 = vlaneseq }
   0xa   :  { %s226_s27 = sld [smem:[#allocation3 + $0x1]] }
   0xb   :  { %s38_s28 = sld [smem:[#allocation4]] }
   0xc   :  { %s41_s1 = sld [smem:[#allocation5]] }
   0xd   :  { %s227_s5 = sld [smem:[#allocation3 + $0x2]] }
   0xe   :  { %s228_s6 = sld [smem:[#allocation4 + $0x1]] }
   0xf   :  { %v31_v1 = vstv %s30_s0  ;;  %s229_s7 = sld [smem:[#allocation5 + $0x1]] }
  0x10   :  { %vm32_vm0 = vcmp.ge.f32.partialorder %v357_v0, %v31_v1  ;;  %v34_v2 = vstv %s226_s27  ;;  %s230_s2 = sld [smem:[#allocation3 + $0x3]] }
  0x11   :  { %vm361_vm1 = vcmp.ge.f32.partialorder %v357_v0, %v34_v2  ;;  %v39_v4 = vstv %s38_s28  ;;  %s231_s8 = sld [smem:[#allocation4 + $0x2]] }
  0x12   :  { %vm36_vm3 = vmxor %vm361_vm1, %vm319_vm2  ;;  %v42_v5 = vstv %s41_s1  ;;  %s232_s3 = sld [smem:[#allocation5 + $0x2]] }
  0x13   :  { %vm37_vm4 = vmand %vm32_vm0, %vm36_vm3  ;;  %v45_v6 = vstv %s227_s5  ;;  %s233_s9 = sld [smem:[#allocation3 + $0x4]] }
  0x14   :  { %v40_v7 = vsel %vm37_vm4, %v39_v4, 0.0  ;;  %v43_v8 = vsel %vm37_vm4, %v42_v5, 0.0  ;;  %vm369_vm5 = vcmp.ge.f32.partialorder %v357_v0, %v45_v6  ;;  %v50_v10 = vstv %s228_s6  ;;  %s234_s10 = sld [smem:[#allocation4 + $0x3]] }
  0x15   :  { %vm47_vm6 = vmxor %vm369_vm5, %vm319_vm2  ;;  %v53_v11 = vstv %s229_s7  ;;  %s235_s11 = sld [smem:[#allocation5 + $0x3]] }
  0x16   :  { %vm48_vm7 = vmand %vm361_vm1, %vm47_vm6  ;;  %v56_v12 = vstv %s230_s2  ;;  %s236_s12 = sld [smem:[#allocation3 + $0x5]] }
  0x17   :  { %v51_v13 = vsel %vm48_vm7, %v50_v10, %v40_v7  ;;  %v54_v14 = vsel %vm48_vm7, %v53_v11, %v43_v8  ;;  %vm379_vm8 = vcmp.ge.f32.partialorder %v357_v0, %v56_v12  ;;  %v61_v16 = vstv %s231_s8  ;;  %s237_s13 = sld [smem:[#allocation4 + $0x4]] }
  0x18   :  { %vm58_vm9 = vmxor %vm379_vm8, %vm319_vm2  ;;  %v64_v17 = vstv %s232_s3  ;;  %s238_s14 = sld [smem:[#allocation5 + $0x4]] }
  0x19   :  { %vm59_vm10 = vmand %vm369_vm5, %vm58_vm9  ;;  %v67_v18 = vstv %s233_s9  ;;  %s239_s15 = sld [smem:[#allocation3 + $0x6]] }
  0x1a   :  { %v62_v19 = vsel %vm59_vm10, %v61_v16, %v51_v13  ;;  %v65_v20 = vsel %vm59_vm10, %v64_v17, %v54_v14  ;;  %vm389_vm11 = vcmp.ge.f32.partialorder %v357_v0, %v67_v18  ;;  %v72_v22 = vstv %s234_s10  ;;  %s240_s16 = sld [smem:[#allocation4 + $0x5]] }
  0x1b   :  { %vm69_vm12 = vmxor %vm389_vm11, %vm319_vm2  ;;  %v75_v23 = vstv %s235_s11  ;;  %s241_s17 = sld [smem:[#allocation5 + $0x5]] }
  0x1c   :  { %vm70_vm13 = vmand %vm379_vm8, %vm69_vm12  ;;  %v78_v24 = vstv %s236_s12  ;;  %s242_s18 = sld [smem:[#allocation3 + $0x7]] }
  0x1d   :  { %v73_v25 = vsel %vm70_vm13, %v72_v22, %v62_v19  ;;  %v76_v26 = vsel %vm70_vm13, %v75_v23, %v65_v20  ;;  %vm399_vm14 = vcmp.ge.f32.partialorder %v357_v0, %v78_v24  ;;  %v83_v28 = vstv %s237_s13  ;;  %s243_s19 = sld [smem:[#allocation4 + $0x6]] }
  0x1e   :  { %vm80_vm15 = vmxor %vm399_vm14, %vm319_vm2  ;;  %v86_v29 = vstv %s238_s14  ;;  %s244_s20 = sld [smem:[#allocation5 + $0x6]] }
  0x1f   :  { %vm81_vm0 = vmand %vm389_vm11, %vm80_vm15  ;;  %v89_v30 = vstv %s239_s15  ;;  %s245_s21 = sld [smem:[#allocation3 + $0x8]] }
  0x20   :  { %v84_v31 = vsel %vm81_vm0, %v83_v28, %v73_v25  ;;  %v87_v32 = vsel %vm81_vm0, %v86_v29, %v76_v26  ;;  %vm409_vm1 = vcmp.ge.f32.partialorder %v357_v0, %v89_v30  ;;  %v94_v34 = vstv %s240_s16  ;;  %s246_s22 = sld [smem:[#allocation4 + $0x7]] }
  0x21   :  { %vm91_vm3 = vmxor %vm409_vm1, %vm319_vm2  ;;  %v97_v35 = vstv %s241_s17  ;;  %s247_s23 = sld [smem:[#allocation5 + $0x7]] }
  0x22   :  { %vm92_vm4 = vmand %vm399_vm14, %vm91_vm3  ;;  %v100_v36 = vstv %s242_s18  ;;  %s248_s24 = sld [smem:[#allocation3 + $0x9]] }
  0x23   :  { %v95_v37 = vsel %vm92_vm4, %v94_v34, %v84_v31  ;;  %v98_v38 = vsel %vm92_vm4, %v97_v35, %v87_v32  ;;  %vm419_vm5 = vcmp.ge.f32.partialorder %v357_v0, %v100_v36  ;;  %v105_v40 = vstv %s243_s19  ;;  %s249_s25 = sld [smem:[#allocation4 + $0x8]] }
  0x24   :  { %vm102_vm6 = vmxor %vm419_vm5, %vm319_vm2  ;;  %v108_v41 = vstv %s244_s20  ;;  %s250_s26 = sld [smem:[#allocation5 + $0x8]] }
  0x25   :  { %vm103_vm7 = vmand %vm409_vm1, %vm102_vm6  ;;  %v111_v42 = vstv %s245_s21  ;;  %s251_s0 = sld [smem:[#allocation3 + $0xa]] }
  0x26   :  { %v106_v43 = vsel %vm103_vm7, %v105_v40, %v95_v37  ;;  %v109_v44 = vsel %vm103_vm7, %v108_v41, %v98_v38  ;;  %vm429_vm8 = vcmp.ge.f32.partialorder %v357_v0, %v111_v42  ;;  %v116_v46 = vstv %s246_s22  ;;  %s252_s27 = sld [smem:[#allocation4 + $0x9]] }
  0x27   :  { %vm113_vm9 = vmxor %vm429_vm8, %vm319_vm2  ;;  %v119_v47 = vstv %s247_s23  ;;  %s253_s28 = sld [smem:[#allocation5 + $0x9]] }
  0x28   :  { %vm114_vm10 = vmand %vm419_vm5, %vm113_vm9  ;;  %v122_v48 = vstv %s248_s24  ;;  %s254_s1 = sld [smem:[#allocation3 + $0xb]] }
  0x29   :  { %v117_v49 = vsel %vm114_vm10, %v116_v46, %v106_v43  ;;  %v120_v50 = vsel %vm114_vm10, %v119_v47, %v109_v44  ;;  %vm439_vm11 = vcmp.ge.f32.partialorder %v357_v0, %v122_v48  ;;  %v127_v52 = vstv %s249_s25  ;;  %s255_s29 = sld [smem:[#allocation4 + $0xa]] }
  0x2a   :  { %vm124_vm12 = vmxor %vm439_vm11, %vm319_vm2  ;;  %v130_v53 = vstv %s250_s26  ;;  %s256_s30 = sld [smem:[#allocation5 + $0xa]] }
  0x2b   :  { %vm125_vm13 = vmand %vm429_vm8, %vm124_vm12  ;;  %v133_v54 = vstv %s251_s0  ;;  %s257_s5 = sld [smem:[#allocation3 + $0xc]] }
  0x2c   :  { %v128_v55 = vsel %vm125_vm13, %v127_v52, %v117_v49  ;;  %v131_v56 = vsel %vm125_vm13, %v130_v53, %v120_v50  ;;  %vm449_vm14 = vcmp.ge.f32.partialorder %v357_v0, %v133_v54  ;;  %v138_v58 = vstv %s252_s27  ;;  %s258_s6 = sld [smem:[#allocation4 + $0xb]] }
  0x2d   :  { %vm135_vm15 = vmxor %vm449_vm14, %vm319_vm2  ;;  %v141_v59 = vstv %s253_s28  ;;  %s259_s7 = sld [smem:[#allocation5 + $0xb]] }
  0x2e   :  { %vm136_vm0 = vmand %vm439_vm11, %vm135_vm15  ;;  %v144_v60 = vstv %s254_s1  ;;  %s260_s2 = sld [smem:[#allocation3 + $0xd]] }
  0x2f   :  { %v139_v61 = vsel %vm136_vm0, %v138_v58, %v128_v55  ;;  %v142_v62 = vsel %vm136_vm0, %v141_v59, %v131_v56  ;;  %vm459_vm1 = vcmp.ge.f32.partialorder %v357_v0, %v144_v60  ;;  %v149_v1 = vstv %s255_s29  ;;  %s261_s8 = sld [smem:[#allocation4 + $0xc]] }
  0x30   :  { %vm146_vm3 = vmxor %vm459_vm1, %vm319_vm2  ;;  %v152_v2 = vstv %s256_s30  ;;  %s262_s3 = sld [smem:[#allocation5 + $0xc]] }
  0x31   :  { %vm147_vm4 = vmand %vm449_vm14, %vm146_vm3  ;;  %v155_v3 = vstv %s257_s5  ;;  %s263_s9 = sld [smem:[#allocation3 + $0xe]] }
  0x32   :  { %v150_v4 = vsel %vm147_vm4, %v149_v1, %v139_v61  ;;  %v153_v5 = vsel %vm147_vm4, %v152_v2, %v142_v62  ;;  %vm469_vm5 = vcmp.ge.f32.partialorder %v357_v0, %v155_v3  ;;  %v160_v7 = vstv %s258_s6  ;;  %s264_s10 = sld [smem:[#allocation4 + $0xd]] }
  0x33   :  { %vm157_vm6 = vmxor %vm469_vm5, %vm319_vm2  ;;  %v163_v8 = vstv %s259_s7  ;;  %s265_s11 = sld [smem:[#allocation5 + $0xd]] }
  0x34   :  { %vm158_vm7 = vmand %vm459_vm1, %vm157_vm6  ;;  %v166_v9 = vstv %s260_s2  ;;  %s266_s12 = sld [smem:[#allocation3 + $0xf]] }
  0x35   :  { %v161_v10 = vsel %vm158_vm7, %v160_v7, %v150_v4  ;;  %v164_v11 = vsel %vm158_vm7, %v163_v8, %v153_v5  ;;  %vm479_vm8 = vcmp.ge.f32.partialorder %v357_v0, %v166_v9  ;;  %v171_v13 = vstv %s261_s8  ;;  %s267_s13 = sld [smem:[#allocation4 + $0xe]] }
  0x36   :  { %vm168_vm9 = vmxor %vm479_vm8, %vm319_vm2  ;;  %v174_v14 = vstv %s262_s3  ;;  %s268_s14 = sld [smem:[#allocation5 + $0xe]] }
  0x37   :  { %vm169_vm10 = vmand %vm469_vm5, %vm168_vm9  ;;  %v177_v15 = vstv %s263_s9  ;;  %s269_s15 = sld [smem:[#allocation3 + $0x10]]  ;;  %vm219_vm5 = vcmp.lt.s32.totalorder %v217_v33, 512 }
  0x38   :  { %v172_v16 = vsel %vm169_vm10, %v171_v13, %v161_v10  ;;  %v175_v17 = vsel %vm169_vm10, %v174_v14, %v164_v11  ;;  %vm489_vm11 = vcmp.ge.f32.partialorder %v357_v0, %v177_v15  ;;  %v182_v19 = vstv %s264_s10  ;;  %s270_s16 = sld [smem:[#allocation4 + $0xf]] }
  0x39   :  { %vm179_vm12 = vmxor %vm489_vm11, %vm319_vm2  ;;  %v185_v20 = vstv %s265_s11  ;;  %s271_s17 = sld [smem:[#allocation5 + $0xf]] }
  0x3a   :  { %vm180_vm13 = vmand %vm479_vm8, %vm179_vm12  ;;  %v188_v21 = vstv %s266_s12  ;;  %s272_s18 = sld [smem:[#allocation4 + $0x10]] }
  0x3b   :  { %v183_v22 = vsel %vm180_vm13, %v182_v19, %v172_v16  ;;  %v186_v23 = vsel %vm180_vm13, %v185_v20, %v175_v17  ;;  %vm499_vm14 = vcmp.ge.f32.partialorder %v357_v0, %v188_v21  ;;  %v193_v25 = vstv %s267_s13  ;;  %s273_s19 = sld [smem:[#allocation5 + $0x10]] }
  0x3c   :  { %vm190_vm15 = vmxor %vm499_vm14, %vm319_vm2  ;;  %v196_v26 = vstv %s268_s14 }
  0x3d   :  { %vm191_vm0 = vmand %vm489_vm11, %vm190_vm15  ;;  %v199_v27 = vstv %s269_s15 }
  0x3e   :  { %v194_v28 = vsel %vm191_vm0, %v193_v25, %v183_v22  ;;  %v197_v29 = vsel %vm191_vm0, %v196_v26, %v186_v23  ;;  %vm200_vm1 = vcmp.ge.f32.partialorder %v357_v0, %v199_v27  ;;  %v204_v30 = vstv %s270_s16 }
  0x3f   :  { %vm201_vm3 = vmxor %vm200_vm1, %vm319_vm2  ;;  %v207_v31 = vstv %s271_s17 }
  0x40   :  { %vm202_vm4 = vmand %vm499_vm14, %vm201_vm3  ;;  %v210_v32 = vstv %s272_s18 }
  0x41   :  { %v205_v34 = vsel %vm202_vm4, %v204_v30, %v194_v28  ;;  %v208_v35 = vsel %vm202_vm4, %v207_v31, %v197_v29  ;;  %v213_v36 = vstv %s273_s19 }
  0x42   :  { %v211_v37 = vsel %vm200_vm1, %v210_v32, %v205_v34  ;;  %v214_v38 = vsel %vm200_vm1, %v213_v36, %v208_v35 }
  0x43   :  { %v215_v39 = vmul.f32 %v211_v37, %v357_v0 }
  0x45   :  { %v216_v40 = vadd.f32 %v215_v39, %v214_v38 }
  0x47   :  { %221 = vst.msk [vmem:[%s518_s4] sm:$0xf] %vm219_vm5, %v216_v40 }

</bundles_post_ra>
